<compile_context>
chip_gen: v7x
topology: tpu7x:2x2x1
jax: 0.10.0
libtpu: 0.0.40
codegen_flags: <defaults>
</compile_context>

<pallas_src>
import functools

import jax
import jax.numpy as jnp
from jax import lax
from jax.experimental import pallas as pl
from jax.experimental.pallas import tpu as pltpu

_LANE = 128
_SUBLANE = 8


def _round_up(n: int, m: int) -> int:
    return ((n + m - 1) // m) * m


# ----------------------------------------------------------------------------
# Kernel: one batch tile, all four layers fused.
# ----------------------------------------------------------------------------
def _mlp_kernel(x_ref,                       # (tb, F)      f32   batch tile
                w1_ref,                      # (F, 128)     bf16
                w2_ref,                      # (128, 128)   bf16  (N padded 64->128)
                w3_ref,                      # (128, 128)   bf16  (K 64->128, N 32->128)
                b123_ref,                    # (3, 128)     f32   packed biases 1..3
                w4t_ref,                     # (c_pad, 128) bf16  W4^T, K padded 32->128
                b4t_ref,                     # (c_pad, 1)   f32
                out_ref):                    # (c_pad, tb)  f32   logits^T
    # QuantStub / DeQuantStub are identity in float mode -> 4 matmuls + 3 ReLUs.
    x = x_ref[...].astype(jnp.bfloat16)                                   # in-register cast

    h = jnp.dot(x, w1_ref[...], preferred_element_type=jnp.float32)      # (tb, 128)
    h = jnp.maximum(h + b123_ref[0:1, :], 0.0).astype(jnp.bfloat16)      # relu1

    h = jnp.dot(h, w2_ref[...], preferred_element_type=jnp.float32)      # (tb, 128)
    h = jnp.maximum(h + b123_ref[1:2, :], 0.0).astype(jnp.bfloat16)      # relu2

    h = jnp.dot(h, w3_ref[...], preferred_element_type=jnp.float32)      # (tb, 128)
    h = jnp.maximum(h + b123_ref[2:3, :], 0.0).astype(jnp.bfloat16)      # relu3

    # Last layer transposed (trans_b pattern): (c_pad, K) x (tb, K) -> (c_pad, tb).
    logits_t = lax.dot_general(w4t_ref[...], h,
                               dimension_numbers=(((1,), (1,)), ((), ())),
                               preferred_element_type=jnp.float32)
    out_ref[...] = logits_t + b4t_ref[...]                                # lane-dense store


# ----------------------------------------------------------------------------
# Tile selection
# ----------------------------------------------------------------------------
def _pick_tile(B: int, block_batch: int):
    """Return (tile_batch, padded_batch)."""
    B = max(int(B), 1)
    if B <= 4 * _LANE:
        # Small batch: single grid step; block dims equal full array dims (legal
        # for any multiple of 8), so padding waste stays <= 7 rows.
        tb = _round_up(B, _SUBLANE)
        return tb, tb
    # Large batch: keep >= 4 grid steps (>= 2 blocks per TensorCore for v7x megacore)
    # and cap tiles at block_batch; size the tile from B to limit last-tile waste.
    n_steps = max(4, pl.cdiv(B, block_batch))
    tb = _round_up(pl.cdiv(B, n_steps), _LANE)   # multiple of 128 -> lane-dense output blocks
    b_pad = _round_up(B, tb)
    return tb, b_pad


# ----------------------------------------------------------------------------
# Wrapper
# ----------------------------------------------------------------------------
def emg_quantized_forward(x, prepared, num_classes, *, block_batch=1024):
    """Fused MLP forward.

    x:        (B, input_size) float32.
    prepared: output of prepare_params().
    Returns   (B, num_classes) float32 logits.
    """
    B, F = x.shape
    w1, w2, w3 = prepared["w1"], prepared["w2"], prepared["w3"]
    b123, w4t, b4t = prepared["b123"], prepared["w4t"], prepared["b4t"]
    c_pad = w4t.shape[0]

    tb, b_pad = _pick_tile(B, block_batch)
    grid = (b_pad // tb,)

    # Only pad the batch dim, only when needed; no feature pad / dtype convert pass.
    if b_pad != B:
        x_in = jnp.zeros((b_pad, F), x.dtype).at[:B].set(x)
    else:
        x_in = x

    in_specs = [
        pl.BlockSpec((tb, F), lambda i: (i, 0)),             # x: tiled along batch
        pl.BlockSpec(w1.shape, lambda i: (0, 0)),            # weights/biases: resident
        pl.BlockSpec(w2.shape, lambda i: (0, 0)),
        pl.BlockSpec(w3.shape, lambda i: (0, 0)),
        pl.BlockSpec(b123.shape, lambda i: (0, 0)),
        pl.BlockSpec(w4t.shape, lambda i: (0, 0)),
        pl.BlockSpec(b4t.shape, lambda i: (0, 0)),
    ]
    out_spec = pl.BlockSpec((c_pad, tb), lambda i: (0, i))   # logits^T: batch on lanes

    cost = pl.CostEstimate(
        flops=2 * b_pad * (F * _LANE + _LANE * _LANE + _LANE * _LANE + _LANE * c_pad),
        transcendentals=0,
        bytes_accessed=(b_pad * F * 4                                   # x (f32)
                        + (w1.size + w2.size + w3.size + w4t.size) * 2  # weights (bf16)
                        + (b123.size + b4t.size) * 4                    # biases (f32)
                        + c_pad * b_pad * 4),                           # logits^T (f32)
    )

    out_t = pl.pallas_call(
        _mlp_kernel,
        out_shape=jax.ShapeDtypeStruct((c_pad, b_pad), jnp.float32),
        grid=grid,
        in_specs=in_specs,
        out_specs=out_spec,
        compiler_params=pltpu.CompilerParams(
            dimension_semantics=("parallel",),   # megacore split over batch tiles on v7x
        ),
        cost_estimate=cost,
    )(x_in, w1, w2, w3, b123, w4t, b4t)

    # Tiny (num_classes x B) slice + transpose back to batch-major.
    return out_t[:num_classes, :B].T


# ----------------------------------------------------------------------------
# Parameter construction / preparation
# ----------------------------------------------------------------------------
def init_params(key, input_size=72, num_classes=8):
    """nn.Linear-like init; weights stored as (in, out) so y = x @ W + b."""
    dims = [(input_size, 128), (128, 64), (64, 32), (32, num_classes)]
    params = {}
    for i, (din, dout) in enumerate(dims, start=1):
        key, kw, kb = jax.random.split(key, 3)
        bound = 1.0 / (din ** 0.5)
        params[f"w{i}"] = jax.random.uniform(kw, (din, dout), jnp.float32, -bound, bound)
        params[f"b{i}"] = jax.random.uniform(kb, (1, dout), jnp.float32, -bound, bound)
    return params


def prepare_params(params):
    """Pack / pad parameters into the kernel's layout.

    * w1 kept at native (72, 128) bf16 (K=72 is sublane-aligned; no feature pad of x).
    * w2, w3 zero-padded to (128, 128) bf16 (zero K-rows / N-cols are exact no-ops).
    * biases 1..3 packed into one (3, 128) f32 block.
    * layer 4 stored transposed: w4t (c_pad, 128) bf16, b4t (c_pad, 1) f32, so the
      kernel emits logits^T with classes on sublanes and batch on lanes.
    """
    w1 = params["w1"].astype(jnp.bfloat16)                                # (72, 128)

    din2, dout2 = params["w2"].shape                                      # (128, 64)
    w2 = jnp.zeros((_LANE, _LANE), jnp.bfloat16).at[:din2, :dout2].set(
        params["w2"].astype(jnp.bfloat16))

    din3, dout3 = params["w3"].shape                                      # (64, 32)
    w3 = jnp.zeros((_LANE, _LANE), jnp.bfloat16).at[:din3, :dout3].set(
        params["w3"].astype(jnp.bfloat16))

    b123 = jnp.zeros((3, _LANE), jnp.float32)
    b123 = b123.at[0, :params["b1"].shape[1]].set(params["b1"][0])
    b123 = b123.at[1, :params["b2"].shape[1]].set(params["b2"][0])
    b123 = b123.at[2, :params["b3"].shape[1]].set(params["b3"][0])

    din4, dout4 = params["w4"].shape                                      # (32, num_classes)
    c_pad = _round_up(dout4, _SUBLANE)
    w4t = jnp.zeros((c_pad, _LANE), jnp.bfloat16).at[:dout4, :din4].set(
        params["w4"].T.astype(jnp.bfloat16))
    b4t = jnp.zeros((c_pad, 1), jnp.float32).at[:dout4, 0].set(params["b4"][0])

    return {"w1": w1, "w2": w2, "w3": w3, "b123": b123, "w4t": w4t, "b4t": b4t}


def reference_forward(x, params):
    """Plain-JAX reference mirroring kernel numerics (bf16 operands, f32 accumulation)."""
    def dot(a, w):
        return jnp.dot(a.astype(jnp.bfloat16), w.astype(jnp.bfloat16),
                       preferred_element_type=jnp.float32)
    h = jnp.maximum(dot(x, params["w1"]) + params["b1"], 0.0)
    h = jnp.maximum(dot(h, params["w2"]) + params["b2"], 0.0)
    h = jnp.maximum(dot(h, params["w3"]) + params["b3"], 0.0)
    return dot(h, params["w4"]) + params["b4"]


if __name__ == "__main__":
    key = jax.random.PRNGKey(0)
    key, kx = jax.random.split(key)

    input_size, num_classes, batch = 72, 8, 2
    params = init_params(key, input_size=input_size, num_classes=num_classes)
    prepared = prepare_params(params)
    x = jax.random.normal(kx, (batch, input_size), jnp.float32)

    fwd = jax.jit(functools.partial(emg_quantized_forward, num_classes=num_classes))
    out = jax.block_until_ready(fwd(x, prepared))

    ref = reference_forward(x, params)
    assert out.shape == (batch, num_classes), out.shape
    assert jnp.allclose(out, ref, atol=1e-2, rtol=1e-2), "Pallas output mismatch"

    # TODO(synk): int8-converted (post-quantization) numerics are not modeled; QuantStub/
    # DeQuantStub are identity in the float model, which is what this kernel implements.
    print("KERNEL_OK")
</pallas_src>

<mosaic_0001>
module attributes {stable_mosaic.version = 11 : i64} {
  func.func @_mlp_kernel(%arg0: i32, %arg1: memref<8x72xf32, #tpu.memory_space<vmem>>, %arg2: memref<72x128xbf16, #tpu.memory_space<vmem>>, %arg3: memref<128x128xbf16, #tpu.memory_space<vmem>>, %arg4: memref<128x128xbf16, #tpu.memory_space<vmem>>, %arg5: memref<3x128xf32, #tpu.memory_space<vmem>>, %arg6: memref<8x128xbf16, #tpu.memory_space<vmem>>, %arg7: memref<8x1xf32, #tpu.memory_space<vmem>>, %arg8: memref<8x8xf32, #tpu.memory_space<vmem>>) attributes {dimension_semantics = [#tpu.dimension_semantics<parallel>], iteration_bounds = array<i64: 1>, scalar_prefetch = 0 : i64, scratch_operands = 0 : i64, tpu.core_type = #tpu.core_type<tc>, window_params = [{transform_indices = @transform_0, window_bounds = array<i64: 8, 72>}, {pipeline_mode = #tpu.pipeline_mode<synchronous>, transform_indices = @transform_1, window_bounds = array<i64: 72, 128>}, {pipeline_mode = #tpu.pipeline_mode<synchronous>, transform_indices = @transform_2, window_bounds = array<i64: 128, 128>}, {pipeline_mode = #tpu.pipeline_mode<synchronous>, transform_indices = @transform_3, window_bounds = array<i64: 128, 128>}, {pipeline_mode = #tpu.pipeline_mode<synchronous>, transform_indices = @transform_4, window_bounds = array<i64: 3, 128>}, {pipeline_mode = #tpu.pipeline_mode<synchronous>, transform_indices = @transform_5, window_bounds = array<i64: 8, 128>}, {pipeline_mode = #tpu.pipeline_mode<synchronous>, transform_indices = @transform_6, window_bounds = array<i64: 8, 1>}, {transform_indices = @transform_7, window_bounds = array<i64: 8, 8>}]} {
    %c0 = arith.constant 0 : index
    %c0_0 = arith.constant 0 : index
    %0 = vector.load %arg1[%c0, %c0_0] : memref<8x72xf32, #tpu.memory_space<vmem>>, vector<8x72xf32>
    %1 = arith.truncf %0 : vector<8x72xf32> to vector<8x72xbf16>
    %c0_1 = arith.constant 0 : index
    %c0_2 = arith.constant 0 : index
    %2 = vector.load %arg2[%c0_1, %c0_2] : memref<72x128xbf16, #tpu.memory_space<vmem>>, vector<72x128xbf16>
    %cst = arith.constant dense<0.000000e+00> : vector<8x128xf32>
    %3 = tpu.matmul %1, %2, %cst {dimension_numbers = #tpu.dot_dimension_numbers<[1], [0], [0], [1], [0, 0, 1, 1], [], []>} : vector<8x72xbf16>, vector<72x128xbf16>, vector<8x128xf32> -> vector<8x128xf32>
    %c0_3 = arith.constant 0 : index
    %c0_4 = arith.constant 0 : index
    %4 = vector.load %arg5[%c0_3, %c0_4] : memref<3x128xf32, #tpu.memory_space<vmem>>, vector<1x128xf32>
    %5 = vector.broadcast %4 : vector<1x128xf32> to vector<8x128xf32>
    %6 = arith.addf %3, %5 : vector<8x128xf32>
    %cst_5 = arith.constant 0.000000e+00 : f32
    %7 = vector.broadcast %cst_5 : f32 to vector<8x128xf32>
    %8 = arith.maximumf %6, %7 : vector<8x128xf32>
    %9 = arith.truncf %8 : vector<8x128xf32> to vector<8x128xbf16>
    %c0_6 = arith.constant 0 : index
    %c0_7 = arith.constant 0 : index
    %10 = vector.load %arg3[%c0_6, %c0_7] : memref<128x128xbf16, #tpu.memory_space<vmem>>, vector<128x128xbf16>
    %cst_8 = arith.constant dense<0.000000e+00> : vector<8x128xf32>
    %11 = tpu.matmul %9, %10, %cst_8 {dimension_numbers = #tpu.dot_dimension_numbers<[1], [0], [0], [1], [0, 0, 1, 1], [], []>} : vector<8x128xbf16>, vector<128x128xbf16>, vector<8x128xf32> -> vector<8x128xf32>
    %c1 = arith.constant 1 : index
    %c0_9 = arith.constant 0 : index
    %12 = vector.load %arg5[%c1, %c0_9] : memref<3x128xf32, #tpu.memory_space<vmem>>, vector<1x128xf32>
    %13 = vector.broadcast %12 : vector<1x128xf32> to vector<8x128xf32>
    %14 = arith.addf %11, %13 : vector<8x128xf32>
    %cst_10 = arith.constant 0.000000e+00 : f32
    %15 = vector.broadcast %cst_10 : f32 to vector<8x128xf32>
    %16 = arith.maximumf %14, %15 : vector<8x128xf32>
    %17 = arith.truncf %16 : vector<8x128xf32> to vector<8x128xbf16>
    %c0_11 = arith.constant 0 : index
    %c0_12 = arith.constant 0 : index
    %18 = vector.load %arg4[%c0_11, %c0_12] : memref<128x128xbf16, #tpu.memory_space<vmem>>, vector<128x128xbf16>
    %cst_13 = arith.constant dense<0.000000e+00> : vector<8x128xf32>
    %19 = tpu.matmul %17, %18, %cst_13 {dimension_numbers = #tpu.dot_dimension_numbers<[1], [0], [0], [1], [0, 0, 1, 1], [], []>} : vector<8x128xbf16>, vector<128x128xbf16>, vector<8x128xf32> -> vector<8x128xf32>
    %c2 = arith.constant 2 : index
    %c0_14 = arith.constant 0 : index
    %20 = vector.load %arg5[%c2, %c0_14] : memref<3x128xf32, #tpu.memory_space<vmem>>, vector<1x128xf32>
    %21 = vector.broadcast %20 : vector<1x128xf32> to vector<8x128xf32>
    %22 = arith.addf %19, %21 : vector<8x128xf32>
    %cst_15 = arith.constant 0.000000e+00 : f32
    %23 = vector.broadcast %cst_15 : f32 to vector<8x128xf32>
    %24 = arith.maximumf %22, %23 : vector<8x128xf32>
    %25 = arith.truncf %24 : vector<8x128xf32> to vector<8x128xbf16>
    %c0_16 = arith.constant 0 : index
    %c0_17 = arith.constant 0 : index
    %26 = vector.load %arg6[%c0_16, %c0_17] : memref<8x128xbf16, #tpu.memory_space<vmem>>, vector<8x128xbf16>
    %cst_18 = arith.constant dense<0.000000e+00> : vector<8x8xf32>
    %27 = tpu.matmul %26, %25, %cst_18 {dimension_numbers = #tpu.dot_dimension_numbers<[1], [1], [0], [0], [0, 0, 1, 0], [], []>} : vector<8x128xbf16>, vector<8x128xbf16>, vector<8x8xf32> -> vector<8x8xf32>
    %c0_19 = arith.constant 0 : index
    %c0_20 = arith.constant 0 : index
    %28 = vector.load %arg7[%c0_19, %c0_20] : memref<8x1xf32, #tpu.memory_space<vmem>>, vector<8x1xf32>
    %29 = vector.broadcast %28 : vector<8x1xf32> to vector<8x8xf32>
    %30 = arith.addf %27, %29 : vector<8x8xf32>
    %c0_21 = arith.constant 0 : index
    %c0_22 = arith.constant 0 : index
    %31 = vector.load %arg8[%c0_21, %c0_22] : memref<8x8xf32, #tpu.memory_space<vmem>>, vector<8x8xf32>
    tpu.vector_store %arg8[%c0_21, %c0_22], %30 {strides = array<i32>} : memref<8x8xf32, #tpu.memory_space<vmem>>, vector<8x8xf32>,
    return
  }
  func.func @transform_0(%arg0: i32) -> (i32, i32) {
    %c0_i32 = arith.constant 0 : i32
    %c0_i32_0 = arith.constant 0 : i32
    return %arg0, %c0_i32 : i32, i32
  }
  func.func @transform_1(%arg0: i32) -> (i32, i32) {
    %c0_i32 = arith.constant 0 : i32
    %c0_i32_0 = arith.constant 0 : i32
    %c0_i32_1 = arith.constant 0 : i32
    return %c0_i32, %c0_i32_0 : i32, i32
  }
  func.func @transform_2(%arg0: i32) -> (i32, i32) {
    %c0_i32 = arith.constant 0 : i32
    %c0_i32_0 = arith.constant 0 : i32
    %c0_i32_1 = arith.constant 0 : i32
    return %c0_i32, %c0_i32_0 : i32, i32
  }
  func.func @transform_3(%arg0: i32) -> (i32, i32) {
    %c0_i32 = arith.constant 0 : i32
    %c0_i32_0 = arith.constant 0 : i32
    %c0_i32_1 = arith.constant 0 : i32
    return %c0_i32, %c0_i32_0 : i32, i32
  }
  func.func @transform_4(%arg0: i32) -> (i32, i32) {
    %c0_i32 = arith.constant 0 : i32
    %c0_i32_0 = arith.constant 0 : i32
    %c0_i32_1 = arith.constant 0 : i32
    return %c0_i32, %c0_i32_0 : i32, i32
  }
  func.func @transform_5(%arg0: i32) -> (i32, i32) {
    %c0_i32 = arith.constant 0 : i32
    %c0_i32_0 = arith.constant 0 : i32
    %c0_i32_1 = arith.constant 0 : i32
    return %c0_i32, %c0_i32_0 : i32, i32
  }
  func.func @transform_6(%arg0: i32) -> (i32, i32) {
    %c0_i32 = arith.constant 0 : i32
    %c0_i32_0 = arith.constant 0 : i32
    %c0_i32_1 = arith.constant 0 : i32
    return %c0_i32, %c0_i32_0 : i32, i32
  }
  func.func @transform_7(%arg0: i32) -> (i32, i32) {
    %c0_i32 = arith.constant 0 : i32
    %c0_i32_0 = arith.constant 0 : i32
    return %c0_i32, %arg0 : i32, i32
  }
}

</mosaic_0001>

<bundles_post_ra>
// kernel: emg_quantized_forward.1
= control target key start
LH: loop header
LB: loop body
LE: loop exit
PB: predicated region body
PF: predicated region fallthrough
CT: control target
= control target key end

     0   :  { %12 = vsyncpa [#allocation3], 0  ;;  %s800_s0 = inlined_call_operand.vmem [shape: f32[8,72], index: 0, kind: input, shape index: {}]   ;;  %s801_s1 = inlined_call_operand.hbm [shape: bf16[72,128], index: 1, kind: input, shape index: {}]   ;;  %s802_s2 = inlined_call_operand.hbm [shape: bf16[128,128], index: 2, kind: input, shape index: {}]   ;;  %s803_s3 = inlined_call_operand.hbm [shape: bf16[128,128], index: 3, kind: input, shape index: {}]   ;;  %s804_s4 = inlined_call_operand.vmem [shape: f32[3,128], index: 4, kind: input, shape index: {}]   ;;  %s805_s5 = inlined_call_operand.vmem [shape: bf16[8,128], index: 5, kind: input, shape index: {}]   ;;  %s806_s6 = inlined_call_operand.vmem [shape: f32[8,1], index: 6, kind: input, shape index: {}]   ;;  %s807_s7 = inlined_call_operand.vmem [shape: f32[8,8], index: 7, kind: output, shape index: {}]  }
   0x1   :  { %13 = vsyncpa [#allocation5], 0  ;;  %s649_s24 = smov [#allocation4]   ;;  %s650_s26 = smov [#allocation2]  }
   0x2   :  { %s33_s25 = sshll.u32 %s649_s24, 4  ;;  %s21_s27 = sshll.u32 %s650_s26, 4  ;;  %s34_s25 = int_to_ptr.vmem [resolvable:$true] %s33_s25  ;;  %s697_s27 = int_to_ptr.vmem [resolvable:$true] %s21_s27 }
   0x3   :  { %s579_s30 = scalar_lea.hbm %s802_s2, 1024 }
   0x4   :  { %p580_p0 = scmp.ne.s32.totalorder %s802_s2, %s579_s30  ;;  %p583_p1 = scmp.lt.u32.totalorder %s579_s30, %s802_s2 }
   0x6   :  { %p585_p2 = pnand %p583_p1, %p580_p0 }
   0x8   :  { %588 = shalt.err (!%p585_p2)
}
   0x9   :  { %s589_s12 = scalar_lea.vmem %s34_s25, 1024  ;;  %p594_p4 = scmp.lt.s32.totalorder %s34_s25, %s34_s25 }
   0xa   :  { %p590_p3 = scmp.ne.s32.totalorder %s34_s25, %s589_s12  ;;  %p595_p5 = scmp.lt.s32.totalorder %s589_s12, %s589_s12 }
   0xc   :  { %p596_p6 = por %p595_p5, %p594_p4 }
   0xe   :  { %p597_p7 = pnand %p596_p6, %p590_p3 }
  0x10   :  { %600 = shalt.err (!%p597_p7)
}
  0x11   :  { %s651_s13 = smov 64   ;;  %s652_s14 = smov 4  }
  0x12   :  { %39 = dma.hbm_to_vmem [thread:$0]  %s802_s2, 1024, %s34_s25, [#allocation5], %s651_s13, %s651_s13, %s652_s14  }
  0x13   :  { %s601_s19 = scalar_lea.hbm %s801_s1, 576 }
  0x14   :  { %p602_p8 = scmp.ne.s32.totalorder %s801_s1, %s601_s19  ;;  %p605_p9 = scmp.lt.u32.totalorder %s601_s19, %s801_s1 }
  0x16   :  { %p607_p10 = pnand %p605_p9, %p602_p8 }
  0x18   :  { %610 = shalt.err (!%p607_p10)
}
  0x19   :  { %s611_s24 = scalar_lea.vmem %s697_s27, 576  ;;  %p616_p12 = scmp.lt.s32.totalorder %s697_s27, %s697_s27 }
  0x1a   :  { %p612_p11 = scmp.ne.s32.totalorder %s697_s27, %s611_s24  ;;  %p617_p13 = scmp.lt.s32.totalorder %s611_s24, %s611_s24 }
  0x1c   :  { %p618_p0 = por %p617_p13, %p616_p12 }
  0x1e   :  { %p619_p1 = pnand %p618_p0, %p612_p11 }
  0x20   :  { %622 = shalt.err (!%p619_p1)
}
  0x21   :  { %27 = dma.hbm_to_vmem [thread:$0]  %s801_s1, 576, %s697_s27, [#allocation3], %s651_s13, %s651_s13, %s652_s14  }
  0x22   :  { %s653_s26 = smov [#allocation6]   ;;  %s623_s8 = scalar_lea.hbm %s803_s3, 1024 }
  0x23   :  { %s45_s28 = sshll.u32 %s653_s26, 4  ;;  %p624_p2 = scmp.ne.s32.totalorder %s803_s3, %s623_s8  ;;  %s46_s28 = int_to_ptr.vmem [resolvable:$true] %s45_s28 }
  0x24   :  { %p627_p3 = scmp.lt.u32.totalorder %s623_s8, %s803_s3 }
  0x26   :  { %p629_p4 = pnand %p627_p3, %p624_p2 }
  0x28   :  { %632 = shalt.err (!%p629_p4)
}
  0x29   :  { %s633_s15 = scalar_lea.vmem %s46_s28, 1024  ;;  %p638_p6 = scmp.lt.s32.totalorder %s46_s28, %s46_s28 }
  0x2a   :  { %p634_p5 = scmp.ne.s32.totalorder %s46_s28, %s633_s15  ;;  %p639_p7 = scmp.lt.s32.totalorder %s633_s15, %s633_s15 }
  0x2c   :  { %p640_p8 = por %p639_p7, %p638_p6 }
  0x2e   :  { %p641_p9 = pnand %p640_p8, %p634_p5 }
  0x30   :  { %644 = shalt.err (!%p641_p9)
}
  0x31   :  { %51 = dma.hbm_to_vmem [thread:$0]  %s803_s3, 1024, %s46_s28, [#allocation5], %s651_s13, %s651_s13, %s652_s14  }
  0x32   :  { %645 = dma.done.wait [#allocation3], 576  }
  0x33   :  { %646 = vsyncadd [#allocation3], 4294966720 }
  0x34   :  { %647 = dma.done.wait [#allocation5], 2048  }
  0x35   :  { %648 = vsyncadd [#allocation5], 4294965248  ;;  %v654_v0 = vmov 0.0   ;;  %vm655_vm0 = vmmov 0   ;;  %v558_v1 = vld [vmem:[#allocation2] sm:$0xff]   ;;  %v559_v2 = vld [vmem:[#allocation2 + $0x8] sm:$0xff]  }
  0x36   :  { %489 = vmatprep.subr.bf16.mxu0 %v654_v0  ;;  %499 = vmatprep.mubr.msk.bf16.mxu0 %vm655_vm0, %v654_v0  ;;  %v560_v3 = vld [vmem:[#allocation2 + $0x10] sm:$0xff]   ;;  %v563_v4 = vld [vmem:[#allocation4] sm:$0xff]   ;;  %v562_v5 = vld [vmem:[#allocation2 + $0x20] ss:$0 sps:$4 sm:$0xff]   ;;  %vm115_vm1 = vcmask 1043456   ;;  %vm111_vm2 = vcmask 588800  }
  0x37   :  { %503 = vmatprep.subr.bf16.mxu1 %v654_v0  ;;  %519 = vmatprep.mubr.msk.bf16.mxu1 %vm655_vm0, %v654_v0  ;;  %v564_v6 = vld [vmem:[#allocation4 + $0x8] sm:$0xff]   ;;  %v561_v7 = vld [vmem:[#allocation2 + $0x18] sm:$0xff]   ;;  %v117_v8 = vsel %vm115_vm1, %v562_v5, 0  ;;  %v68_v10 = vld [vmem:[%s800_s0] sm:$0xff]  ;;  %v656_v42 = vmov 0   ;;  %vm430_vm3 = vcmask 64512  }
  0x38   :  { %490 = vmatpush3.bf16.msra.mxu0 %v558_v1  ;;  %504 = vmatpush3.bf16.msra.mxu1 %v563_v4  ;;  %v565_v9 = vld [vmem:[#allocation4 + $0x10] sm:$0xff]   ;;  %v566_v11 = vld [vmem:[#allocation4 + $0x18] sm:$0xff]   ;;  %v69_v12 = vpack.c.bf16 %v68_v10, %v68_v10  ;;  %v567_v13 = vld [vmem:[#allocation4 + $0x20] sm:$0xff]  }
  0x39   :  { %491 = vmatprep.subr.bf16.mxu0 %v654_v0  ;;  %505 = vmatprep.subr.bf16.mxu1 %v654_v0  ;;  %v568_v14 = vld [vmem:[#allocation4 + $0x28] sm:$0xff]   ;;  %v569_v15 = vld [vmem:[#allocation4 + $0x30] sm:$0xff]   ;;  %v570_v16 = vld [vmem:[#allocation4 + $0x38] sm:$0xff]  }
  0x3a   :  { %v571_v17 = vld [vmem:[#allocation6] sm:$0xff]   ;;  %v572_v18 = vld [vmem:[#allocation6 + $0x8] sm:$0xff]   ;;  %v573_v19 = vld [vmem:[#allocation6 + $0x10] sm:$0xff]   ;;  %557 = vset.pattern.permute.xlu0 %v656_v42 }
  0x3b   :  { %v574_v20 = vld [vmem:[#allocation6 + $0x18] sm:$0xff]   ;;  %v575_v21 = vld [vmem:[#allocation6 + $0x20] sm:$0xff]   ;;  %v576_v22 = vld [vmem:[#allocation6 + $0x28] sm:$0xff]  }
  0x3c   :  { %492 = vmatpush3.bf16.msra.mxu0 %v559_v2  ;;  %506 = vmatpush3.bf16.msra.mxu1 %v564_v6  ;;  %v438_v23 = vld [vmem:[%s804_s4] ss:$0 sm:$0xff]  ;;  %v577_v31 = vld [vmem:[#allocation6 + $0x30] sm:$0xff]   ;;  %v445_v33 = vld [vmem:[%s804_s4 + $0x1] ss:$0 sm:$0xff] }
  0x3d   :  { %493 = vmatprep.subr.bf16.mxu0 %v654_v0  ;;  %507 = vmatprep.subr.bf16.mxu1 %v654_v0  ;;  %v578_v32 = vld [vmem:[#allocation6 + $0x38] sm:$0xff]  }
  0x3e   :  { %v384_v41 = vld [vmem:[%s806_s6] sm:$0xff] }
  0x3f   :  { %387 = vperm.xlu0 %557, %v384_v41   ;;  %v454_v43 = vld [vmem:[%s804_s4 + $0x2] ss:$0 sm:$0xff] }
  0x40   :  { %494 = vmatpush3.bf16.msra.mxu0 %v560_v3  ;;  %508 = vmatpush3.bf16.msra.mxu1 %v565_v9  ;;  %v383_v51 = vld [vmem:[%s805_s5] sm:$0xf] }
  0x41   :  { %495 = vmatprep.subr.bf16.mxu0 %v654_v0  ;;  %509 = vmatprep.subr.bf16.mxu1 %v654_v0 }
  0x44   :  { %496 = vmatpush3.bf16.msra.mxu0 %v561_v7  ;;  %510 = vmatpush3.bf16.msra.mxu1 %v566_v11 }
  0x45   :  { %497 = vmatprep.subr.bf16.mxu0 %v654_v0  ;;  %511 = vmatprep.subr.bf16.mxu1 %v654_v0 }
  0x48   :  { %498 = vmatpush3.bf16.msra.mxu0 %v117_v8  ;;  %512 = vmatpush3.bf16.msra.mxu1 %v567_v13 }
  0x49   :  { %523 = vmatprep.subr.bf16.mxu0 %v654_v0  ;;  %513 = vmatprep.subr.bf16.mxu1 %v654_v0 }
  0x4b   :  { %500 = vmatmul.mubr.msk.bf16.vlgmr.msra.gmra.mrb[0].mxu0 %vm111_vm2, %v69_v12 }
  0x4c   :  { %539 = vmatprep.mubr.msk.bf16.mxu0 %vm655_vm0, %v654_v0  ;;  %514 = vmatpush3.bf16.msra.mxu1 %v568_v14 }
  0x4d   :  { %515 = vmatprep.subr.bf16.mxu1 %v654_v0  ;;  %524 = vmatpush3.bf16.msra.mxu0 %v571_v17 }
  0x4e   :  { %525 = vmatprep.subr.bf16.mxu0 %v654_v0 }
  0x50   :  { %516 = vmatpush3.bf16.msra.mxu1 %v569_v15 }
  0x51   :  { %517 = vmatprep.subr.bf16.mxu1 %v654_v0  ;;  %526 = vmatpush3.bf16.msra.mxu0 %v572_v18 }
  0x52   :  { %527 = vmatprep.subr.bf16.mxu0 %v654_v0 }
  0x54   :  { %518 = vmatpush3.bf16.msra.mxu1 %v570_v16 }
  0x55   :  { %543 = vmatprep.subr.bf16.mxu1 %v654_v0  ;;  %528 = vmatpush3.bf16.msra.mxu0 %v573_v19 }
  0x56   :  { %529 = vmatprep.subr.bf16.mxu0 %v654_v0 }
  0x59   :  { %530 = vmatpush3.bf16.msra.mxu0 %v574_v20 }
  0x5a   :  { %531 = vmatprep.subr.bf16.mxu0 %v654_v0 }
  0x5d   :  { %532 = vmatpush3.bf16.msra.mxu0 %v575_v21 }
  0x5e   :  { %533 = vmatprep.subr.bf16.mxu0 %v654_v0 }
  0x61   :  { %534 = vmatpush3.bf16.msra.mxu0 %v576_v22 }
  0x62   :  { %535 = vmatprep.subr.bf16.mxu0 %v654_v0 }
  0x65   :  { %536 = vmatpush3.bf16.msra.mxu0 %v577_v31 }
  0x66   :  { %537 = vmatprep.subr.bf16.mxu0 %v654_v0 }
  0x69   :  { %538 = vmatpush3.bf16.msra.mxu0 %v578_v32 }
  0xbe   :  { %v388_v52 = vpop.permute.xlu0 %387 }
 0x11e   :  { %v153_v24 = vpop.f32.mrb[0].mxu0 }
 0x11f   :  { %v154_v25 = vadd.f32 %v438_v23, %v153_v24  ;;  %v501_v26 = vpop.f32.mrb[1].mxu0 }
 0x120   :  { %v156_v27 = vpop.f32.mrb[2].mxu0 }
 0x121   :  { %v159_v28 = vmax.f32 %v154_v25, 0.0  ;;  %v502_v29 = vpop.f32.mrb[3].mxu0 }
 0x123   :  { %v160_v30 = vpack.c.bf16 %v159_v28, %v159_v28 }
 0x125   :  { %520 = vmatmul.mubr.bf16.vlgmr.msra.gmra.mrb[0].mxu1 %v160_v30 }
 0x126   :  { %545 = vmatprep.mubr.msk.bf16.mxu1 %vm655_vm0, %v654_v0 }
 0x1f8   :  { %v264_v34 = vpop.f32.mrb[0].mxu1 }
 0x1f9   :  { %v265_v35 = vadd.f32 %v445_v33, %v264_v34  ;;  %v521_v36 = vpop.f32.mrb[1].mxu1 }
 0x1fa   :  { %v267_v37 = vpop.f32.mrb[2].mxu1 }
 0x1fb   :  { %v270_v38 = vmax.f32 %v265_v35, 0.0  ;;  %v522_v39 = vpop.f32.mrb[3].mxu1 }
 0x1fd   :  { %v271_v40 = vpack.c.bf16 %v270_v38, %v270_v38 }
 0x1ff   :  { %540 = vmatmul.mubr.bf16.vlgmr.msra.gmra.mrb[4].mxu0 %v271_v40 }
 0x2d2   :  { %v375_v44 = vpop.f32.mrb[4].mxu0 }
 0x2d3   :  { %v376_v45 = vadd.f32 %v454_v43, %v375_v44  ;;  %v541_v46 = vpop.f32.mrb[5].mxu0 }
 0x2d4   :  { %v378_v47 = vpop.f32.mrb[6].mxu0 }
 0x2d5   :  { %v381_v48 = vmax.f32 %v376_v45, 0.0  ;;  %v542_v49 = vpop.f32.mrb[7].mxu0 }
 0x2d7   :  { %v382_v50 = vpack.c.bf16 %v381_v48, %v381_v48 }
 0x2d9   :  { %544 = vmatpush3.bf16.xpose.msra.mxu1 %v382_v50 }
 0x2e0   :  { %546 = vmatmul.mubr.bf16.vlgmr.msra.gmra.mrb[4].mxu1 %v383_v51 }
 0x3b3   :  { %v424_v53 = vpop.f32.mrb[4].mxu1 }
 0x3b4   :  { %v425_v54 = vadd.f32 %v424_v53, %v388_v52  ;;  %v547_v55 = vpop.f32.mrb[5].mxu1 }
 0x3b5   :  { %v427_v56 = vpop.f32.mrb[6].mxu1 }
 0x3b6   :  { %431 = vst.msk [vmem:[%s807_s7] sm:$0xff] %vm430_vm3, %v425_v54  ;;  %v548_v57 = vpop.f32.mrb[7].mxu1 }
 0x3b7   :  { %436 = vsyncpa [#allocation3], 1 }
 0x3b8   :  { %437 = vsyncpa [#allocation5], 1 }

</bundles_post_ra>
